<compile_context>
chip_gen: v6e
topology: v6e:2x2x1
jax: 0.10.0
libtpu: 0.0.40
codegen_flags: <defaults>
</compile_context>

<pallas_src>
import math

import jax
import jax.numpy as jnp
from jax import lax
from jax.experimental import pallas as pl
from jax.experimental.pallas import tpu as pltpu


# 48 MiB scoped VMEM: comfortably above the 16/32 MiB defaults and under
# v7x's 64 MiB physical capacity (v5e/v6e have 128 MiB).
_VMEM_LIMIT = 48 * 1024 * 1024


def _row_tile(m, tm):
    """Row-tile size: multiple of 8, and >= 2 grid steps whenever M > 8 so the
    'parallel' grid axis can be sharded across v7x's two TensorCores."""
    if m <= 8:
        return m                                    # full-extent block (legal)
    half = ((-(-m // 2)) + 7) // 8 * 8              # ceil(M/2), rounded up to 8
    return max(8, min((tm // 8) * 8, half))


# ---------------------------------------------------------------------------
# Kernel 1: row-tiled fused linear  (x @ W + b, optional GELU)
# ---------------------------------------------------------------------------
def _make_linear_kernel(apply_gelu):
    def kernel(x_ref, w_ref, b_ref, o_ref):
        acc = jnp.dot(x_ref[...], w_ref[...],
                      preferred_element_type=jnp.float32)
        acc = acc + b_ref[...]
        if apply_gelu:
            acc = jax.nn.gelu(acc, approximate=True)   # EUP-friendly tanh form
        o_ref[...] = acc.astype(o_ref.dtype)
    return kernel


def linear(x, w, b, *, apply_gelu=False, tm=512):
    """x: (M, K); w: (K, N) pre-transposed; b: (1, N) f32  ->  (M, N)."""
    M, K = x.shape
    N = w.shape[1]
    tm = _row_tile(M, tm)

    cost = pl.CostEstimate(
        flops=2 * M * K * N,
        transcendentals=M * N if apply_gelu else 0,
        bytes_accessed=(M * K + M * N) * x.dtype.itemsize
        + K * N * w.dtype.itemsize + N * 4,
    )
    return pl.pallas_call(
        _make_linear_kernel(apply_gelu),
        out_shape=jax.ShapeDtypeStruct((M, N), x.dtype),
        grid=(pl.cdiv(M, tm),),
        in_specs=[
            pl.BlockSpec((tm, K), lambda i: (i, 0)),   # streamed activations
            pl.BlockSpec((K, N), lambda i: (0, 0)),    # VMEM-resident weight
            pl.BlockSpec((1, N), lambda i: (0, 0)),    # VMEM-resident bias
        ],
        out_specs=pl.BlockSpec((tm, N), lambda i: (i, 0)),
        compiler_params=pltpu.CompilerParams(
            dimension_semantics=("parallel",),
            vmem_limit_bytes=_VMEM_LIMIT,
        ),
        cost_estimate=cost,
    )(x, w, b)


# ---------------------------------------------------------------------------
# Kernel 2: row-tiled fused linear + residual add + LayerNorm epilogue
# ---------------------------------------------------------------------------
def _make_linear_res_ln_kernel(eps):
    def kernel(x_ref, w_ref, b_ref, r_ref, g_ref, bt_ref, o_ref):
        acc = jnp.dot(x_ref[...], w_ref[...],
                      preferred_element_type=jnp.float32)
        acc = acc + b_ref[...] + r_ref[...].astype(jnp.float32)
        mean = jnp.mean(acc, axis=-1, keepdims=True)
        cen = acc - mean
        var = jnp.mean(cen * cen, axis=-1, keepdims=True)
        o_ref[...] = (cen * lax.rsqrt(var + eps) * g_ref[...]
                      + bt_ref[...]).astype(o_ref.dtype)
    return kernel


def linear_residual_ln(x, w, b, residual, gamma, beta, *, eps, tm=512):
    """LayerNorm(x @ w + b + residual) * gamma + beta, rows tiled.

    The output block always spans the full feature width N, so the per-row
    mean / variance are exact.
    """
    M, K = x.shape
    N = w.shape[1]
    tm = _row_tile(M, tm)

    cost = pl.CostEstimate(
        flops=2 * M * K * N + 8 * M * N,
        transcendentals=M,
        bytes_accessed=(M * K + 2 * M * N) * x.dtype.itemsize
        + K * N * w.dtype.itemsize + 3 * N * 4,
    )
    row_in = pl.BlockSpec((tm, K), lambda i: (i, 0))
    row_out = pl.BlockSpec((tm, N), lambda i: (i, 0))
    vec = pl.BlockSpec((1, N), lambda i: (0, 0))
    return pl.pallas_call(
        _make_linear_res_ln_kernel(eps),
        out_shape=jax.ShapeDtypeStruct((M, N), x.dtype),
        grid=(pl.cdiv(M, tm),),
        in_specs=[row_in,
                  pl.BlockSpec((K, N), lambda i: (0, 0)),   # resident weight
                  vec,                                      # bias
                  row_out,                                  # streamed residual
                  vec, vec],                                # gamma, beta
        out_specs=row_out,
        compiler_params=pltpu.CompilerParams(
            dimension_semantics=("parallel",),
            vmem_limit_bytes=_VMEM_LIMIT,
        ),
        cost_estimate=cost,
    )(x, w, b, residual, gamma, beta)


# ---------------------------------------------------------------------------
# Kernel 3: row-tiled standalone LayerNorm (embedding LN)
# ---------------------------------------------------------------------------
def _make_ln_kernel(eps):
    def kernel(x_ref, g_ref, b_ref, o_ref):
        x = x_ref[...].astype(jnp.float32)
        mean = jnp.mean(x, axis=-1, keepdims=True)
        cen = x - mean
        var = jnp.mean(cen * cen, axis=-1, keepdims=True)
        o_ref[...] = (cen * lax.rsqrt(var + eps) * g_ref[...]
                      + b_ref[...]).astype(o_ref.dtype)
    return kernel


def layer_norm(x, gamma, beta, *, eps, tm=512):
    """x: (M, D); gamma/beta: (1, D) f32  ->  (M, D)."""
    M, D = x.shape
    tm = _row_tile(M, tm)
    row = pl.BlockSpec((tm, D), lambda i: (i, 0))
    vec = pl.BlockSpec((1, D), lambda i: (0, 0))
    return pl.pallas_call(
        _make_ln_kernel(eps),
        out_shape=jax.ShapeDtypeStruct((M, D), x.dtype),
        grid=(pl.cdiv(M, tm),),
        in_specs=[row, vec, vec],
        out_specs=row,
        compiler_params=pltpu.CompilerParams(
            dimension_semantics=("parallel",),
            vmem_limit_bytes=_VMEM_LIMIT,
        ),
    )(x, gamma, beta)


# ---------------------------------------------------------------------------
# Kernel 4: per-batch attention, all heads per grid step, (B, S, D) layout
# ---------------------------------------------------------------------------
def _make_attn_kernel(num_heads, head_dim, scale):
    def kernel(q_ref, k_ref, v_ref, m_ref, o_ref):
        q = q_ref[0] * scale            # (S, D); scale folded into q (S*Dh ops)
        k = k_ref[0]                    # (S, D)
        v = v_ref[0]                    # (S, D)
        mask = m_ref[0]                 # (1, S) additive key bias, f32
        for h in range(num_heads):      # static unroll; heads share one grid step
            lo = h * head_dim
            hi = lo + head_dim
            q_h, k_h, v_h = q[:, lo:hi], k[:, lo:hi], v[:, lo:hi]
            # contract last dims directly -> no k.T materialization
            s = lax.dot_general(q_h, k_h, (((1,), (1,)), ((), ())),
                                preferred_element_type=jnp.float32)
            s = s + mask
            s = s - jnp.max(s, axis=-1, keepdims=True)
            p = jnp.exp(s)
            p = p * pl.reciprocal(jnp.sum(p, axis=-1, keepdims=True),
                                  approx=True)
            ctx = jnp.dot(p.astype(v_h.dtype), v_h,
                          preferred_element_type=jnp.float32)
            o_ref[0, :, lo:hi] = ctx.astype(o_ref.dtype)
    return kernel


def attention(q, k, v, mask_bias, *, num_heads):
    """q, k, v: (B, S, D) in the layout produced by the q/k/v linears;
    mask_bias: (B, 1, S) additive key mask (f32)  ->  (B, S, D)."""
    B, S, D = q.shape
    head_dim = D // num_heads
    scale = 1.0 / math.sqrt(head_dim)
    blk = pl.BlockSpec((1, S, D), lambda b: (b, 0, 0))
    mspec = pl.BlockSpec((1, 1, S), lambda b: (b, 0, 0))
    return pl.pallas_call(
        _make_attn_kernel(num_heads, head_dim, scale),
        out_shape=jax.ShapeDtypeStruct((B, S, D), q.dtype),
        grid=(B,),
        in_specs=[blk, blk, blk, mspec],
        out_specs=blk,
        compiler_params=pltpu.CompilerParams(
            dimension_semantics=("parallel",),
            vmem_limit_bytes=_VMEM_LIMIT,
        ),
    )(q, k, v, mask_bias)


# ---------------------------------------------------------------------------
# Parameter preparation (one-time, outside jit)
# ---------------------------------------------------------------------------
def prepare_params(params, compute_dtype):
    """Convert PyTorch-layout fp32 params into the kernel-ready layout:
      * weight matrices pre-transposed to (in, out) -> no per-forward w.T op
      * matrices / embedding tables cast to the compute dtype (bf16 in prod)
      * biases + LayerNorm gamma/beta kept f32 (added to the f32 accumulators)
        and reshaped to (1, N) rows for the VMEM-resident BlockSpecs.
    """
    def mat(w):
        return jnp.asarray(w, jnp.float32).T.astype(compute_dtype)

    def vec(v):
        return jnp.asarray(v, jnp.float32).reshape(1, -1)

    prepared = {
        "word_emb": jnp.asarray(params["word_emb"], compute_dtype),
        "pos_emb": jnp.asarray(params["pos_emb"], compute_dtype),
        "type_emb": jnp.asarray(params["type_emb"], compute_dtype),
        "emb_ln_g": vec(params["emb_ln_g"]),
        "emb_ln_b": vec(params["emb_ln_b"]),
        "layers": [],
    }
    for lp in params["layers"]:
        prepared["layers"].append({
            "q_w": mat(lp["q_w"]), "q_b": vec(lp["q_b"]),
            "k_w": mat(lp["k_w"]), "k_b": vec(lp["k_b"]),
            "v_w": mat(lp["v_w"]), "v_b": vec(lp["v_b"]),
            "o_w": mat(lp["o_w"]), "o_b": vec(lp["o_b"]),
            "attn_ln_g": vec(lp["attn_ln_g"]),
            "attn_ln_b": vec(lp["attn_ln_b"]),
            "ffn_w1": mat(lp["ffn_w1"]), "ffn_b1": vec(lp["ffn_b1"]),
            "ffn_w2": mat(lp["ffn_w2"]), "ffn_b2": vec(lp["ffn_b2"]),
            "ffn_ln_g": vec(lp["ffn_ln_g"]),
            "ffn_ln_b": vec(lp["ffn_ln_b"]),
        })
    return prepared


# ---------------------------------------------------------------------------
# Full EmbeddingModel forward (Pallas) and a pure-JAX reference
# ---------------------------------------------------------------------------
def embedding_model_forward(kparams, input_ids, attention_mask, cfg):
    """Pallas forward. `kparams` must come from prepare_params()."""
    B, S = input_ids.shape
    D, H = cfg["hidden"], cfg["heads"]
    eps = cfg["eps"]

    # Embeddings: XLA fuses the word gather with the positional/type
    # broadcast-add (no (B*S, D) jnp.tile materialization); the LayerNorm is a
    # Pallas kernel. The data-dependent row gather itself stays in XLA.
    emb = (kparams["word_emb"][input_ids]
           + kparams["pos_emb"][:S][None]
           + kparams["type_emb"][0][None, None])            # (B, S, D)
    h = layer_norm(emb.reshape(B * S, D),
                   kparams["emb_ln_g"], kparams["emb_ln_b"], eps=eps)

    mask_bias = ((1.0 - attention_mask.astype(jnp.float32)) * -1e9
                 ).reshape(B, 1, S)

    for lp in kparams["layers"]:
        # --- self attention (the attention kernel consumes and produces the
        #     (B, S, D) layout: no XLA head-split / merge transposes) ---
        q = linear(h, lp["q_w"], lp["q_b"])
        k = linear(h, lp["k_w"], lp["k_b"])
        v = linear(h, lp["v_w"], lp["v_b"])
        ctx = attention(q.reshape(B, S, D), k.reshape(B, S, D),
                        v.reshape(B, S, D), mask_bias, num_heads=H)
        # --- output projection fused with residual add + LayerNorm ---
        h = linear_residual_ln(ctx.reshape(B * S, D), lp["o_w"], lp["o_b"],
                               h, lp["attn_ln_g"], lp["attn_ln_b"], eps=eps)
        # --- feed forward; down-projection fused with residual + LayerNorm ---
        ff = linear(h, lp["ffn_w1"], lp["ffn_b1"], apply_gelu=True)
        h = linear_residual_ln(ff, lp["ffn_w2"], lp["ffn_b2"],
                               h, lp["ffn_ln_g"], lp["ffn_ln_b"], eps=eps)

    return h.reshape(B, S, D)[:, 0, :]         # last_hidden_state[:, 0, :]


def reference_forward(params, input_ids, attention_mask, cfg):
    B, S = input_ids.shape
    D, H = cfg["hidden"], cfg["heads"]
    Dh = D // H
    eps = cfg["eps"]

    def ln(x, g, b):
        m = jnp.mean(x, axis=-1, keepdims=True)
        v = jnp.mean((x - m) ** 2, axis=-1, keepdims=True)
        return (x - m) * lax.rsqrt(v + eps) * g + b

    def proj(x, w, b):
        return x @ w.T + b

    h = (params["word_emb"][input_ids]
         + params["pos_emb"][:S][None]
         + params["type_emb"][0][None, None])
    h = ln(h, params["emb_ln_g"], params["emb_ln_b"])
    bias = (1.0 - attention_mask.astype(jnp.float32))[:, None, None, :] * -1e9

    for lp in params["layers"]:
        q = proj(h, lp["q_w"], lp["q_b"]).reshape(B, S, H, Dh).transpose(0, 2, 1, 3)
        k = proj(h, lp["k_w"], lp["k_b"]).reshape(B, S, H, Dh).transpose(0, 2, 1, 3)
        v = proj(h, lp["v_w"], lp["v_b"]).reshape(B, S, H, Dh).transpose(0, 2, 1, 3)
        s = q @ k.transpose(0, 1, 3, 2) / math.sqrt(Dh) + bias
        p = jax.nn.softmax(s, axis=-1)
        ctx = (p @ v).transpose(0, 2, 1, 3).reshape(B, S, D)
        h = ln(proj(ctx, lp["o_w"], lp["o_b"]) + h,
               lp["attn_ln_g"], lp["attn_ln_b"])
        ff = jax.nn.gelu(proj(h, lp["ffn_w1"], lp["ffn_b1"]))
        ff = proj(ff, lp["ffn_w2"], lp["ffn_b2"])
        h = ln(ff + h, lp["ffn_ln_g"], lp["ffn_ln_b"])
    return h[:, 0, :]


def init_params(key, cfg):
    D, I = cfg["hidden"], cfg["intermediate"]
    V, P, L = cfg["vocab"], cfg["max_pos"], cfg["layers"]

    def dense(k, shape):
        return 0.02 * jax.random.normal(k, shape, dtype=jnp.float32)

    keys = jax.random.split(key, 3 + L)
    params = {
        "word_emb": dense(keys[0], (V, D)),
        "pos_emb": dense(keys[1], (P, D)),
        "type_emb": dense(keys[2], (2, D)),
        "emb_ln_g": jnp.ones((D,), jnp.float32),
        "emb_ln_b": jnp.zeros((D,), jnp.float32),
        "layers": [],
    }
    for layer_idx in range(L):
        lk = jax.random.split(keys[3 + layer_idx], 12)
        params["layers"].append({
            "q_w": dense(lk[0], (D, D)), "q_b": dense(lk[1], (D,)),
            "k_w": dense(lk[2], (D, D)), "k_b": dense(lk[3], (D,)),
            "v_w": dense(lk[4], (D, D)), "v_b": dense(lk[5], (D,)),
            "o_w": dense(lk[6], (D, D)), "o_b": dense(lk[7], (D,)),
            "attn_ln_g": jnp.ones((D,), jnp.float32),
            "attn_ln_b": jnp.zeros((D,), jnp.float32),
            "ffn_w1": dense(lk[8], (I, D)), "ffn_b1": dense(lk[9], (I,)),
            "ffn_w2": dense(lk[10], (D, I)), "ffn_b2": dense(lk[11], (D,)),
            "ffn_ln_g": jnp.ones((D,), jnp.float32),
            "ffn_ln_b": jnp.zeros((D,), jnp.float32),
        })
    return params


if __name__ == "__main__":
    cfg = dict(vocab=64, max_pos=16, hidden=32, heads=2, layers=2,
               intermediate=64, eps=1e-12)
    B, S = 2, 8

    key = jax.random.PRNGKey(0)
    kp, kid = jax.random.split(key)
    params = init_params(kp, cfg)
    input_ids = jax.random.randint(kid, (B, S), 0, cfg["vocab"],
                                   dtype=jnp.int32)
    attention_mask = jnp.array([[1, 1, 1, 1, 1, 1, 1, 1],
                                [1, 1, 1, 1, 1, 1, 0, 0]], dtype=jnp.int32)

    ref = reference_forward(params, input_ids, attention_mask, cfg)

    fwd = jax.jit(lambda p, ids, m: embedding_model_forward(p, ids, m, cfg))

    # fp32 path: tight structural correctness check of the kernels.
    out_f32 = jax.block_until_ready(
        fwd(prepare_params(params, jnp.float32), input_ids, attention_mask))
    assert out_f32.shape == (B, cfg["hidden"])
    assert jnp.allclose(out_f32, ref, atol=1e-2, rtol=1e-2), (
        f"fp32 max abs diff {jnp.max(jnp.abs(out_f32 - ref))}")

    # bf16 path: production dtype (half the HBM traffic, bf16 MXU path);
    # accumulation / LayerNorm / softmax stay f32 inside the kernels.
    out_bf16 = jax.block_until_ready(
        fwd(prepare_params(params, jnp.bfloat16), input_ids, attention_mask))
    assert out_bf16.shape == (B, cfg["hidden"])
    assert jnp.allclose(out_bf16.astype(jnp.float32), ref,
                        atol=8e-2, rtol=8e-2), (
        f"bf16 max abs diff {jnp.max(jnp.abs(out_bf16.astype(jnp.float32) - ref))}")

    print("KERNEL_OK")
</pallas_src>

<mosaic_0001>
module attributes {stable_mosaic.version = 11 : i64} {
  func.func @kernel(%arg0: i32, %arg1: memref<8x32xf32, #tpu.memory_space<vmem>>, %arg2: memref<1x32xf32, #tpu.memory_space<vmem>>, %arg3: memref<1x32xf32, #tpu.memory_space<vmem>>, %arg4: memref<8x32xf32, #tpu.memory_space<vmem>>) attributes {dimension_semantics = [#tpu.dimension_semantics<parallel>], iteration_bounds = array<i64: 2>, scalar_prefetch = 0 : i64, scratch_operands = 0 : i64, tpu.core_type = #tpu.core_type<tc>, window_params = [{transform_indices = @transform_0, window_bounds = array<i64: 8, 32>}, {pipeline_mode = #tpu.pipeline_mode<synchronous>, transform_indices = @transform_1, window_bounds = array<i64: 1, 32>}, {pipeline_mode = #tpu.pipeline_mode<synchronous>, transform_indices = @transform_2, window_bounds = array<i64: 1, 32>}, {transform_indices = @transform_3, window_bounds = array<i64: 8, 32>}]} {
    %c0 = arith.constant 0 : index
    %c0_0 = arith.constant 0 : index
    %0 = vector.load %arg1[%c0, %c0_0] : memref<8x32xf32, #tpu.memory_space<vmem>>, vector<8x32xf32>
    %cst = arith.constant dense<0.000000e+00> : vector<8xf32>
    %1 = vector.multi_reduction <add>, %0, %cst [1] : vector<8x32xf32> to vector<8xf32>
    %2 = vector.shape_cast %1 : vector<8xf32> to vector<8x1xf32>
    %cst_1 = arith.constant 3.200000e+01 : f32
    %3 = vector.broadcast %cst_1 : f32 to vector<8x1xf32>
    %4 = arith.divf %2, %3 : vector<8x1xf32>
    %5 = vector.broadcast %4 : vector<8x1xf32> to vector<8x32xf32>
    %6 = arith.subf %0, %5 : vector<8x32xf32>
    %7 = arith.mulf %6, %6 : vector<8x32xf32>
    %cst_2 = arith.constant dense<0.000000e+00> : vector<8xf32>
    %8 = vector.multi_reduction <add>, %7, %cst_2 [1] : vector<8x32xf32> to vector<8xf32>
    %9 = vector.shape_cast %8 : vector<8xf32> to vector<8x1xf32>
    %cst_3 = arith.constant 3.200000e+01 : f32
    %10 = vector.broadcast %cst_3 : f32 to vector<8x1xf32>
    %11 = arith.divf %9, %10 : vector<8x1xf32>
    %cst_4 = arith.constant 9.99999996E-13 : f32
    %12 = vector.broadcast %cst_4 : f32 to vector<8x1xf32>
    %13 = arith.addf %11, %12 : vector<8x1xf32>
    %14 = math.rsqrt %13 : vector<8x1xf32>
    %15 = vector.broadcast %14 : vector<8x1xf32> to vector<8x32xf32>
    %16 = arith.mulf %6, %15 : vector<8x32xf32>
    %c0_5 = arith.constant 0 : index
    %c0_6 = arith.constant 0 : index
    %17 = vector.load %arg2[%c0_5, %c0_6] : memref<1x32xf32, #tpu.memory_space<vmem>>, vector<1x32xf32>
    %18 = vector.broadcast %17 : vector<1x32xf32> to vector<8x32xf32>
    %19 = arith.mulf %16, %18 : vector<8x32xf32>
    %c0_7 = arith.constant 0 : index
    %c0_8 = arith.constant 0 : index
    %20 = vector.load %arg3[%c0_7, %c0_8] : memref<1x32xf32, #tpu.memory_space<vmem>>, vector<1x32xf32>
    %21 = vector.broadcast %20 : vector<1x32xf32> to vector<8x32xf32>
    %22 = arith.addf %19, %21 : vector<8x32xf32>
    %c0_9 = arith.constant 0 : index
    %c0_10 = arith.constant 0 : index
    %23 = vector.load %arg4[%c0_9, %c0_10] : memref<8x32xf32, #tpu.memory_space<vmem>>, vector<8x32xf32>
    tpu.vector_store %arg4[%c0_9, %c0_10], %22 {strides = array<i32>} : memref<8x32xf32, #tpu.memory_space<vmem>>, vector<8x32xf32>,
    return
  }
  func.func @transform_0(%arg0: i32) -> (i32, i32) {
    %c0_i32 = arith.constant 0 : i32
    %c0_i32_0 = arith.constant 0 : i32
    return %arg0, %c0_i32 : i32, i32
  }
  func.func @transform_1(%arg0: i32) -> (i32, i32) {
    %c0_i32 = arith.constant 0 : i32
    %c0_i32_0 = arith.constant 0 : i32
    %c0_i32_1 = arith.constant 0 : i32
    return %c0_i32, %c0_i32_0 : i32, i32
  }
  func.func @transform_2(%arg0: i32) -> (i32, i32) {
    %c0_i32 = arith.constant 0 : i32
    %c0_i32_0 = arith.constant 0 : i32
    %c0_i32_1 = arith.constant 0 : i32
    return %c0_i32, %c0_i32_0 : i32, i32
  }
  func.func @transform_3(%arg0: i32) -> (i32, i32) {
    %c0_i32 = arith.constant 0 : i32
    %c0_i32_0 = arith.constant 0 : i32
    return %arg0, %c0_i32 : i32, i32
  }
}

module attributes {stable_mosaic.version = 11 : i64} {
  func.func @kernel(%arg0: i32, %arg1: memref<8x32xf32, #tpu.memory_space<vmem>>, %arg2: memref<32x32xf32, #tpu.memory_space<vmem>>, %arg3: memref<1x32xf32, #tpu.memory_space<vmem>>, %arg4: memref<8x32xf32, #tpu.memory_space<vmem>>) attributes {dimension_semantics = [#tpu.dimension_semantics<parallel>], iteration_bounds = array<i64: 2>, scalar_prefetch = 0 : i64, scratch_operands = 0 : i64, tpu.core_type = #tpu.core_type<tc>, window_params = [{transform_indices = @transform_0, window_bounds = array<i64: 8, 32>}, {pipeline_mode = #tpu.pipeline_mode<synchronous>, transform_indices = @transform_1, window_bounds = array<i64: 32, 32>}, {pipeline_mode = #tpu.pipeline_mode<synchronous>, transform_indices = @transform_2, window_bounds = array<i64: 1, 32>}, {transform_indices = @transform_3, window_bounds = array<i64: 8, 32>}]} {
    %c0 = arith.constant 0 : index
    %c0_0 = arith.constant 0 : index
    %0 = vector.load %arg1[%c0, %c0_0] : memref<8x32xf32, #tpu.memory_space<vmem>>, vector<8x32xf32>
    %c0_1 = arith.constant 0 : index
    %c0_2 = arith.constant 0 : index
    %1 = vector.load %arg2[%c0_1, %c0_2] : memref<32x32xf32, #tpu.memory_space<vmem>>, vector<32x32xf32>
    %cst = arith.constant dense<0.000000e+00> : vector<8x32xf32>
    %2 = tpu.matmul %0, %1, %cst {dimension_numbers = #tpu.dot_dimension_numbers<[1], [0], [0], [1], [0, 0, 1, 1], [], []>} : vector<8x32xf32>, vector<32x32xf32>, vector<8x32xf32> -> vector<8x32xf32>
    %c0_3 = arith.constant 0 : index
    %c0_4 = arith.constant 0 : index
    %3 = vector.load %arg3[%c0_3, %c0_4] : memref<1x32xf32, #tpu.memory_space<vmem>>, vector<1x32xf32>
    %4 = vector.broadcast %3 : vector<1x32xf32> to vector<8x32xf32>
    %5 = arith.addf %2, %4 : vector<8x32xf32>
    %c0_5 = arith.constant 0 : index
    %c0_6 = arith.constant 0 : index
    %6 = vector.load %arg4[%c0_5, %c0_6] : memref<8x32xf32, #tpu.memory_space<vmem>>, vector<8x32xf32>
    tpu.vector_store %arg4[%c0_5, %c0_6], %5 {strides = array<i32>} : memref<8x32xf32, #tpu.memory_space<vmem>>, vector<8x32xf32>,
    return
  }
  func.func @transform_0(%arg0: i32) -> (i32, i32) {
    %c0_i32 = arith.constant 0 : i32
    %c0_i32_0 = arith.constant 0 : i32
    return %arg0, %c0_i32 : i32, i32
  }
  func.func @transform_1(%arg0: i32) -> (i32, i32) {
    %c0_i32 = arith.constant 0 : i32
    %c0_i32_0 = arith.constant 0 : i32
    %c0_i32_1 = arith.constant 0 : i32
    return %c0_i32, %c0_i32_0 : i32, i32
  }
  func.func @transform_2(%arg0: i32) -> (i32, i32) {
    %c0_i32 = arith.constant 0 : i32
    %c0_i32_0 = arith.constant 0 : i32
    %c0_i32_1 = arith.constant 0 : i32
    return %c0_i32, %c0_i32_0 : i32, i32
  }
  func.func @transform_3(%arg0: i32) -> (i32, i32) {
    %c0_i32 = arith.constant 0 : i32
    %c0_i32_0 = arith.constant 0 : i32
    return %arg0, %c0_i32 : i32, i32
  }
}

module attributes {stable_mosaic.version = 11 : i64} {
  func.func @kernel(%arg0: i32, %arg1: memref<1x8x32xf32, #tpu.memory_space<vmem>>, %arg2: memref<1x8x32xf32, #tpu.memory_space<vmem>>, %arg3: memref<1x8x32xf32, #tpu.memory_space<vmem>>, %arg4: memref<1x1x8xf32, #tpu.memory_space<vmem>>, %arg5: memref<1x8x32xf32, #tpu.memory_space<vmem>>) attributes {dimension_semantics = [#tpu.dimension_semantics<parallel>], iteration_bounds = array<i64: 2>, scalar_prefetch = 0 : i64, scratch_operands = 0 : i64, tpu.core_type = #tpu.core_type<tc>, window_params = [{transform_indices = @transform_0, window_bounds = array<i64: 1, 8, 32>}, {transform_indices = @transform_1, window_bounds = array<i64: 1, 8, 32>}, {transform_indices = @transform_2, window_bounds = array<i64: 1, 8, 32>}, {transform_indices = @transform_3, window_bounds = array<i64: 1, 1, 8>}, {transform_indices = @transform_4, window_bounds = array<i64: 1, 8, 32>}]} {
    %c0 = arith.constant 0 : index
    %c0_0 = arith.constant 0 : index
    %c0_1 = arith.constant 0 : index
    %0 = vector.load %arg1[%c0, %c0_0, %c0_1] : memref<1x8x32xf32, #tpu.memory_space<vmem>>, vector<1x8x32xf32>
    %1 = vector.shape_cast %0 : vector<1x8x32xf32> to vector<8x32xf32>
    %cst = arith.constant 2.500000e-01 : f32
    %2 = vector.broadcast %cst : f32 to vector<8x32xf32>
    %3 = arith.mulf %1, %2 : vector<8x32xf32>
    %c0_2 = arith.constant 0 : index
    %c0_3 = arith.constant 0 : index
    %c0_4 = arith.constant 0 : index
    %4 = vector.load %arg2[%c0_2, %c0_3, %c0_4] : memref<1x8x32xf32, #tpu.memory_space<vmem>>, vector<1x8x32xf32>
    %5 = vector.shape_cast %4 : vector<1x8x32xf32> to vector<8x32xf32>
    %c0_5 = arith.constant 0 : index
    %c0_6 = arith.constant 0 : index
    %c0_7 = arith.constant 0 : index
    %6 = vector.load %arg3[%c0_5, %c0_6, %c0_7] : memref<1x8x32xf32, #tpu.memory_space<vmem>>, vector<1x8x32xf32>
    %7 = vector.shape_cast %6 : vector<1x8x32xf32> to vector<8x32xf32>
    %c0_8 = arith.constant 0 : index
    %c0_9 = arith.constant 0 : index
    %c0_10 = arith.constant 0 : index
    %8 = vector.load %arg4[%c0_8, %c0_9, %c0_10] : memref<1x1x8xf32, #tpu.memory_space<vmem>>, vector<1x1x8xf32>
    %9 = vector.shape_cast %8 : vector<1x1x8xf32> to vector<1x8xf32>
    %10 = vector.extract_strided_slice %3 {offsets = [0, 0], sizes = [8, 16], strides = [1, 1]} : vector<8x32xf32> to vector<8x16xf32>
    %11 = vector.extract_strided_slice %5 {offsets = [0, 0], sizes = [8, 16], strides = [1, 1]} : vector<8x32xf32> to vector<8x16xf32>
    %12 = vector.extract_strided_slice %7 {offsets = [0, 0], sizes = [8, 16], strides = [1, 1]} : vector<8x32xf32> to vector<8x16xf32>
    %cst_11 = arith.constant dense<0.000000e+00> : vector<8x8xf32>
    %13 = tpu.matmul %10, %11, %cst_11 {dimension_numbers = #tpu.dot_dimension_numbers<[1], [1], [0], [0], [0, 0, 1, 0], [], []>} : vector<8x16xf32>, vector<8x16xf32>, vector<8x8xf32> -> vector<8x8xf32>
    %14 = vector.broadcast %9 : vector<1x8xf32> to vector<8x8xf32>
    %15 = arith.addf %13, %14 : vector<8x8xf32>
    %cst_12 = arith.constant dense<0xFF800000> : vector<8xf32>
    %16 = vector.multi_reduction <maximumf>, %15, %cst_12 [1] : vector<8x8xf32> to vector<8xf32>
    %17 = vector.shape_cast %16 : vector<8xf32> to vector<8x1xf32>
    %18 = vector.broadcast %17 : vector<8x1xf32> to vector<8x8xf32>
    %19 = arith.subf %15, %18 : vector<8x8xf32>
    %20 = math.exp %19 : vector<8x8xf32>
    %cst_13 = arith.constant dense<0.000000e+00> : vector<8xf32>
    %21 = vector.multi_reduction <add>, %20, %cst_13 [1] : vector<8x8xf32> to vector<8xf32>
    %22 = vector.shape_cast %21 : vector<8xf32> to vector<8x1xf32>
    %23 = tpu.reciprocal %22 {approx = true} : vector<8x1xf32> -> vector<8x1xf32>
    %24 = vector.broadcast %23 : vector<8x1xf32> to vector<8x8xf32>
    %25 = arith.mulf %20, %24 : vector<8x8xf32>
    %cst_14 = arith.constant dense<0.000000e+00> : vector<8x16xf32>
    %26 = tpu.matmul %25, %12, %cst_14 {dimension_numbers = #tpu.dot_dimension_numbers<[1], [0], [0], [1], [0, 0, 1, 1], [], []>} : vector<8x8xf32>, vector<8x16xf32>, vector<8x16xf32> -> vector<8x16xf32>
    %c0_15 = arith.constant 0 : index
    %c0_16 = arith.constant 0 : index
    %c0_17 = arith.constant 0 : index
    %27 = vector.load %arg5[%c0_15, %c0_16, %c0_17] : memref<1x8x32xf32, #tpu.memory_space<vmem>>, vector<1x8x16xf32>
    %28 = vector.shape_cast %27 : vector<1x8x16xf32> to vector<8x16xf32>
    %29 = vector.shape_cast %26 : vector<8x16xf32> to vector<1x8x16xf32>
    tpu.vector_store %arg5[%c0_15, %c0_16, %c0_17], %29 {strides = array<i32>} : memref<1x8x32xf32, #tpu.memory_space<vmem>>, vector<1x8x16xf32>,
    %30 = vector.extract_strided_slice %3 {offsets = [0, 16], sizes = [8, 16], strides = [1, 1]} : vector<8x32xf32> to vector<8x16xf32>
    %31 = vector.extract_strided_slice %5 {offsets = [0, 16], sizes = [8, 16], strides = [1, 1]} : vector<8x32xf32> to vector<8x16xf32>
    %32 = vector.extract_strided_slice %7 {offsets = [0, 16], sizes = [8, 16], strides = [1, 1]} : vector<8x32xf32> to vector<8x16xf32>
    %cst_18 = arith.constant dense<0.000000e+00> : vector<8x8xf32>
    %33 = tpu.matmul %30, %31, %cst_18 {dimension_numbers = #tpu.dot_dimension_numbers<[1], [1], [0], [0], [0, 0, 1, 0], [], []>} : vector<8x16xf32>, vector<8x16xf32>, vector<8x8xf32> -> vector<8x8xf32>
    %34 = vector.broadcast %9 : vector<1x8xf32> to vector<8x8xf32>
    %35 = arith.addf %33, %34 : vector<8x8xf32>
    %cst_19 = arith.constant dense<0xFF800000> : vector<8xf32>
    %36 = vector.multi_reduction <maximumf>, %35, %cst_19 [1] : vector<8x8xf32> to vector<8xf32>
    %37 = vector.shape_cast %36 : vector<8xf32> to vector<8x1xf32>
    %38 = vector.broadcast %37 : vector<8x1xf32> to vector<8x8xf32>
    %39 = arith.subf %35, %38 : vector<8x8xf32>
    %40 = math.exp %39 : vector<8x8xf32>
    %cst_20 = arith.constant dense<0.000000e+00> : vector<8xf32>
    %41 = vector.multi_reduction <add>, %40, %cst_20 [1] : vector<8x8xf32> to vector<8xf32>
    %42 = vector.shape_cast %41 : vector<8xf32> to vector<8x1xf32>
    %43 = tpu.reciprocal %42 {approx = true} : vector<8x1xf32> -> vector<8x1xf32>
    %44 = vector.broadcast %43 : vector<8x1xf32> to vector<8x8xf32>
    %45 = arith.mulf %40, %44 : vector<8x8xf32>
    %cst_21 = arith.constant dense<0.000000e+00> : vector<8x16xf32>
    %46 = tpu.matmul %45, %32, %cst_21 {dimension_numbers = #tpu.dot_dimension_numbers<[1], [0], [0], [1], [0, 0, 1, 1], [], []>} : vector<8x8xf32>, vector<8x16xf32>, vector<8x16xf32> -> vector<8x16xf32>
    %c0_22 = arith.constant 0 : index
    %c0_23 = arith.constant 0 : index
    %c16 = arith.constant 16 : index
    %47 = vector.load %arg5[%c0_22, %c0_23, %c16] : memref<1x8x32xf32, #tpu.memory_space<vmem>>, vector<1x8x16xf32>
    %48 = vector.shape_cast %47 : vector<1x8x16xf32> to vector<8x16xf32>
    %49 = vector.shape_cast %46 : vector<8x16xf32> to vector<1x8x16xf32>
    tpu.vector_store %arg5[%c0_22, %c0_23, %c16], %49 {strides = array<i32>} : memref<1x8x32xf32, #tpu.memory_space<vmem>>, vector<1x8x16xf32>,
    return
  }
  func.func @transform_0(%arg0: i32) -> (i32, i32, i32) {
    %c0_i32 = arith.constant 0 : i32
    %c0_i32_0 = arith.constant 0 : i32
    %c0_i32_1 = arith.constant 0 : i32
    return %arg0, %c0_i32, %c0_i32_0 : i32, i32, i32
  }
  func.func @transform_1(%arg0: i32) -> (i32, i32, i32) {
    %c0_i32 = arith.constant 0 : i32
    %c0_i32_0 = arith.constant 0 : i32
    %c0_i32_1 = arith.constant 0 : i32
    return %arg0, %c0_i32, %c0_i32_0 : i32, i32, i32
  }
  func.func @transform_2(%arg0: i32) -> (i32, i32, i32) {
    %c0_i32 = arith.constant 0 : i32
    %c0_i32_0 = arith.constant 0 : i32
    %c0_i32_1 = arith.constant 0 : i32
    return %arg0, %c0_i32, %c0_i32_0 : i32, i32, i32
  }
  func.func @transform_3(%arg0: i32) -> (i32, i32, i32) {
    %c0_i32 = arith.constant 0 : i32
    %c0_i32_0 = arith.constant 0 : i32
    %c0_i32_1 = arith.constant 0 : i32
    return %arg0, %c0_i32, %c0_i32_0 : i32, i32, i32
  }
  func.func @transform_4(%arg0: i32) -> (i32, i32, i32) {
    %c0_i32 = arith.constant 0 : i32
    %c0_i32_0 = arith.constant 0 : i32
    %c0_i32_1 = arith.constant 0 : i32
    return %arg0, %c0_i32, %c0_i32_0 : i32, i32, i32
  }
}

module attributes {stable_mosaic.version = 11 : i64} {
  func.func @kernel(%arg0: i32, %arg1: memref<8x32xf32, #tpu.memory_space<vmem>>, %arg2: memref<32x32xf32, #tpu.memory_space<vmem>>, %arg3: memref<1x32xf32, #tpu.memory_space<vmem>>, %arg4: memref<8x32xf32, #tpu.memory_space<vmem>>, %arg5: memref<1x32xf32, #tpu.memory_space<vmem>>, %arg6: memref<1x32xf32, #tpu.memory_space<vmem>>, %arg7: memref<8x32xf32, #tpu.memory_space<vmem>>) attributes {dimension_semantics = [#tpu.dimension_semantics<parallel>], iteration_bounds = array<i64: 2>, scalar_prefetch = 0 : i64, scratch_operands = 0 : i64, tpu.core_type = #tpu.core_type<tc>, window_params = [{transform_indices = @transform_0, window_bounds = array<i64: 8, 32>}, {pipeline_mode = #tpu.pipeline_mode<synchronous>, transform_indices = @transform_1, window_bounds = array<i64: 32, 32>}, {pipeline_mode = #tpu.pipeline_mode<synchronous>, transform_indices = @transform_2, window_bounds = array<i64: 1, 32>}, {transform_indices = @transform_3, window_bounds = array<i64: 8, 32>}, {pipeline_mode = #tpu.pipeline_mode<synchronous>, transform_indices = @transform_4, window_bounds = array<i64: 1, 32>}, {pipeline_mode = #tpu.pipeline_mode<synchronous>, transform_indices = @transform_5, window_bounds = array<i64: 1, 32>}, {transform_indices = @transform_6, window_bounds = array<i64: 8, 32>}]} {
    %c0 = arith.constant 0 : index
    %c0_0 = arith.constant 0 : index
    %0 = vector.load %arg1[%c0, %c0_0] : memref<8x32xf32, #tpu.memory_space<vmem>>, vector<8x32xf32>
    %c0_1 = arith.constant 0 : index
    %c0_2 = arith.constant 0 : index
    %1 = vector.load %arg2[%c0_1, %c0_2] : memref<32x32xf32, #tpu.memory_space<vmem>>, vector<32x32xf32>
    %cst = arith.constant dense<0.000000e+00> : vector<8x32xf32>
    %2 = tpu.matmul %0, %1, %cst {dimension_numbers = #tpu.dot_dimension_numbers<[1], [0], [0], [1], [0, 0, 1, 1], [], []>} : vector<8x32xf32>, vector<32x32xf32>, vector<8x32xf32> -> vector<8x32xf32>
    %c0_3 = arith.constant 0 : index
    %c0_4 = arith.constant 0 : index
    %3 = vector.load %arg3[%c0_3, %c0_4] : memref<1x32xf32, #tpu.memory_space<vmem>>, vector<1x32xf32>
    %4 = vector.broadcast %3 : vector<1x32xf32> to vector<8x32xf32>
    %5 = arith.addf %2, %4 : vector<8x32xf32>
    %c0_5 = arith.constant 0 : index
    %c0_6 = arith.constant 0 : index
    %6 = vector.load %arg4[%c0_5, %c0_6] : memref<8x32xf32, #tpu.memory_space<vmem>>, vector<8x32xf32>
    %7 = arith.addf %5, %6 : vector<8x32xf32>
    %cst_7 = arith.constant dense<0.000000e+00> : vector<8xf32>
    %8 = vector.multi_reduction <add>, %7, %cst_7 [1] : vector<8x32xf32> to vector<8xf32>
    %9 = vector.shape_cast %8 : vector<8xf32> to vector<8x1xf32>
    %cst_8 = arith.constant 3.200000e+01 : f32
    %10 = vector.broadcast %cst_8 : f32 to vector<8x1xf32>
    %11 = arith.divf %9, %10 : vector<8x1xf32>
    %12 = vector.broadcast %11 : vector<8x1xf32> to vector<8x32xf32>
    %13 = arith.subf %7, %12 : vector<8x32xf32>
    %14 = arith.mulf %13, %13 : vector<8x32xf32>
    %cst_9 = arith.constant dense<0.000000e+00> : vector<8xf32>
    %15 = vector.multi_reduction <add>, %14, %cst_9 [1] : vector<8x32xf32> to vector<8xf32>
    %16 = vector.shape_cast %15 : vector<8xf32> to vector<8x1xf32>
    %cst_10 = arith.constant 3.200000e+01 : f32
    %17 = vector.broadcast %cst_10 : f32 to vector<8x1xf32>
    %18 = arith.divf %16, %17 : vector<8x1xf32>
    %cst_11 = arith.constant 9.99999996E-13 : f32
    %19 = vector.broadcast %cst_11 : f32 to vector<8x1xf32>
    %20 = arith.addf %18, %19 : vector<8x1xf32>
    %21 = math.rsqrt %20 : vector<8x1xf32>
    %22 = vector.broadcast %21 : vector<8x1xf32> to vector<8x32xf32>
    %23 = arith.mulf %13, %22 : vector<8x32xf32>
    %c0_12 = arith.constant 0 : index
    %c0_13 = arith.constant 0 : index
    %24 = vector.load %arg5[%c0_12, %c0_13] : memref<1x32xf32, #tpu.memory_space<vmem>>, vector<1x32xf32>
    %25 = vector.broadcast %24 : vector<1x32xf32> to vector<8x32xf32>
    %26 = arith.mulf %23, %25 : vector<8x32xf32>
    %c0_14 = arith.constant 0 : index
    %c0_15 = arith.constant 0 : index
    %27 = vector.load %arg6[%c0_14, %c0_15] : memref<1x32xf32, #tpu.memory_space<vmem>>, vector<1x32xf32>
    %28 = vector.broadcast %27 : vector<1x32xf32> to vector<8x32xf32>
    %29 = arith.addf %26, %28 : vector<8x32xf32>
    %c0_16 = arith.constant 0 : index
    %c0_17 = arith.constant 0 : index
    %30 = vector.load %arg7[%c0_16, %c0_17] : memref<8x32xf32, #tpu.memory_space<vmem>>, vector<8x32xf32>
    tpu.vector_store %arg7[%c0_16, %c0_17], %29 {strides = array<i32>} : memref<8x32xf32, #tpu.memory_space<vmem>>, vector<8x32xf32>,
    return
  }
  func.func @transform_0(%arg0: i32) -> (i32, i32) {
    %c0_i32 = arith.constant 0 : i32
    %c0_i32_0 = arith.constant 0 : i32
    return %arg0, %c0_i32 : i32, i32
  }
  func.func @transform_1(%arg0: i32) -> (i32, i32) {
    %c0_i32 = arith.constant 0 : i32
    %c0_i32_0 = arith.constant 0 : i32
    %c0_i32_1 = arith.constant 0 : i32
    return %c0_i32, %c0_i32_0 : i32, i32
  }
  func.func @transform_2(%arg0: i32) -> (i32, i32) {
    %c0_i32 = arith.constant 0 : i32
    %c0_i32_0 = arith.constant 0 : i32
    %c0_i32_1 = arith.constant 0 : i32
    return %c0_i32, %c0_i32_0 : i32, i32
  }
  func.func @transform_3(%arg0: i32) -> (i32, i32) {
    %c0_i32 = arith.constant 0 : i32
    %c0_i32_0 = arith.constant 0 : i32
    return %arg0, %c0_i32 : i32, i32
  }
  func.func @transform_4(%arg0: i32) -> (i32, i32) {
    %c0_i32 = arith.constant 0 : i32
    %c0_i32_0 = arith.constant 0 : i32
    %c0_i32_1 = arith.constant 0 : i32
    return %c0_i32, %c0_i32_0 : i32, i32
  }
  func.func @transform_5(%arg0: i32) -> (i32, i32) {
    %c0_i32 = arith.constant 0 : i32
    %c0_i32_0 = arith.constant 0 : i32
    %c0_i32_1 = arith.constant 0 : i32
    return %c0_i32, %c0_i32_0 : i32, i32
  }
  func.func @transform_6(%arg0: i32) -> (i32, i32) {
    %c0_i32 = arith.constant 0 : i32
    %c0_i32_0 = arith.constant 0 : i32
    return %arg0, %c0_i32 : i32, i32
  }
}

module attributes {stable_mosaic.version = 11 : i64} {
  func.func @kernel(%arg0: i32, %arg1: memref<8x32xf32, #tpu.memory_space<vmem>>, %arg2: memref<32x64xf32, #tpu.memory_space<vmem>>, %arg3: memref<1x64xf32, #tpu.memory_space<vmem>>, %arg4: memref<8x64xf32, #tpu.memory_space<vmem>>) attributes {dimension_semantics = [#tpu.dimension_semantics<parallel>], iteration_bounds = array<i64: 2>, scalar_prefetch = 0 : i64, scratch_operands = 0 : i64, tpu.core_type = #tpu.core_type<tc>, window_params = [{transform_indices = @transform_0, window_bounds = array<i64: 8, 32>}, {pipeline_mode = #tpu.pipeline_mode<synchronous>, transform_indices = @transform_1, window_bounds = array<i64: 32, 64>}, {pipeline_mode = #tpu.pipeline_mode<synchronous>, transform_indices = @transform_2, window_bounds = array<i64: 1, 64>}, {transform_indices = @transform_3, window_bounds = array<i64: 8, 64>}]} {
    %c0 = arith.constant 0 : index
    %c0_0 = arith.constant 0 : index
    %0 = vector.load %arg1[%c0, %c0_0] : memref<8x32xf32, #tpu.memory_space<vmem>>, vector<8x32xf32>
    %c0_1 = arith.constant 0 : index
    %c0_2 = arith.constant 0 : index
    %1 = vector.load %arg2[%c0_1, %c0_2] : memref<32x64xf32, #tpu.memory_space<vmem>>, vector<32x64xf32>
    %cst = arith.constant dense<0.000000e+00> : vector<8x64xf32>
    %2 = tpu.matmul %0, %1, %cst {dimension_numbers = #tpu.dot_dimension_numbers<[1], [0], [0], [1], [0, 0, 1, 1], [], []>} : vector<8x32xf32>, vector<32x64xf32>, vector<8x64xf32> -> vector<8x64xf32>
    %c0_3 = arith.constant 0 : index
    %c0_4 = arith.constant 0 : index
    %3 = vector.load %arg3[%c0_3, %c0_4] : memref<1x64xf32, #tpu.memory_space<vmem>>, vector<1x64xf32>
    %4 = vector.broadcast %3 : vector<1x64xf32> to vector<8x64xf32>
    %5 = arith.addf %2, %4 : vector<8x64xf32>
    %6 = arith.mulf %5, %5 : vector<8x64xf32>
    %7 = arith.mulf %5, %6 : vector<8x64xf32>
    %cst_5 = arith.constant 4.471500e-02 : f32
    %8 = vector.broadcast %cst_5 : f32 to vector<8x64xf32>
    %9 = arith.mulf %8, %7 : vector<8x64xf32>
    %10 = arith.addf %5, %9 : vector<8x64xf32>
    %cst_6 = arith.constant 0.797884583 : f32
    %11 = vector.broadcast %cst_6 : f32 to vector<8x64xf32>
    %12 = arith.mulf %11, %10 : vector<8x64xf32>
    %13 = math.tanh %12 : vector<8x64xf32>
    %cst_7 = arith.constant 1.000000e+00 : f32
    %14 = vector.broadcast %cst_7 : f32 to vector<8x64xf32>
    %15 = arith.addf %14, %13 : vector<8x64xf32>
    %cst_8 = arith.constant 5.000000e-01 : f32
    %16 = vector.broadcast %cst_8 : f32 to vector<8x64xf32>
    %17 = arith.mulf %16, %15 : vector<8x64xf32>
    %18 = arith.mulf %5, %17 : vector<8x64xf32>
    %c0_9 = arith.constant 0 : index
    %c0_10 = arith.constant 0 : index
    %19 = vector.load %arg4[%c0_9, %c0_10] : memref<8x64xf32, #tpu.memory_space<vmem>>, vector<8x64xf32>
    tpu.vector_store %arg4[%c0_9, %c0_10], %18 {strides = array<i32>} : memref<8x64xf32, #tpu.memory_space<vmem>>, vector<8x64xf32>,
    return
  }
  func.func @transform_0(%arg0: i32) -> (i32, i32) {
    %c0_i32 = arith.constant 0 : i32
    %c0_i32_0 = arith.constant 0 : i32
    return %arg0, %c0_i32 : i32, i32
  }
  func.func @transform_1(%arg0: i32) -> (i32, i32) {
    %c0_i32 = arith.constant 0 : i32
    %c0_i32_0 = arith.constant 0 : i32
    %c0_i32_1 = arith.constant 0 : i32
    return %c0_i32, %c0_i32_0 : i32, i32
  }
  func.func @transform_2(%arg0: i32) -> (i32, i32) {
    %c0_i32 = arith.constant 0 : i32
    %c0_i32_0 = arith.constant 0 : i32
    %c0_i32_1 = arith.constant 0 : i32
    return %c0_i32, %c0_i32_0 : i32, i32
  }
  func.func @transform_3(%arg0: i32) -> (i32, i32) {
    %c0_i32 = arith.constant 0 : i32
    %c0_i32_0 = arith.constant 0 : i32
    return %arg0, %c0_i32 : i32, i32
  }
}

module attributes {stable_mosaic.version = 11 : i64} {
  func.func @kernel(%arg0: i32, %arg1: memref<8x64xf32, #tpu.memory_space<vmem>>, %arg2: memref<64x32xf32, #tpu.memory_space<vmem>>, %arg3: memref<1x32xf32, #tpu.memory_space<vmem>>, %arg4: memref<8x32xf32, #tpu.memory_space<vmem>>, %arg5: memref<1x32xf32, #tpu.memory_space<vmem>>, %arg6: memref<1x32xf32, #tpu.memory_space<vmem>>, %arg7: memref<8x32xf32, #tpu.memory_space<vmem>>) attributes {dimension_semantics = [#tpu.dimension_semantics<parallel>], iteration_bounds = array<i64: 2>, scalar_prefetch = 0 : i64, scratch_operands = 0 : i64, tpu.core_type = #tpu.core_type<tc>, window_params = [{transform_indices = @transform_0, window_bounds = array<i64: 8, 64>}, {pipeline_mode = #tpu.pipeline_mode<synchronous>, transform_indices = @transform_1, window_bounds = array<i64: 64, 32>}, {pipeline_mode = #tpu.pipeline_mode<synchronous>, transform_indices = @transform_2, window_bounds = array<i64: 1, 32>}, {transform_indices = @transform_3, window_bounds = array<i64: 8, 32>}, {pipeline_mode = #tpu.pipeline_mode<synchronous>, transform_indices = @transform_4, window_bounds = array<i64: 1, 32>}, {pipeline_mode = #tpu.pipeline_mode<synchronous>, transform_indices = @transform_5, window_bounds = array<i64: 1, 32>}, {transform_indices = @transform_6, window_bounds = array<i64: 8, 32>}]} {
    %c0 = arith.constant 0 : index
    %c0_0 = arith.constant 0 : index
    %0 = vector.load %arg1[%c0, %c0_0] : memref<8x64xf32, #tpu.memory_space<vmem>>, vector<8x64xf32>
    %c0_1 = arith.constant 0 : index
    %c0_2 = arith.constant 0 : index
    %1 = vector.load %arg2[%c0_1, %c0_2] : memref<64x32xf32, #tpu.memory_space<vmem>>, vector<64x32xf32>
    %cst = arith.constant dense<0.000000e+00> : vector<8x32xf32>
    %2 = tpu.matmul %0, %1, %cst {dimension_numbers = #tpu.dot_dimension_numbers<[1], [0], [0], [1], [0, 0, 1, 1], [], []>} : vector<8x64xf32>, vector<64x32xf32>, vector<8x32xf32> -> vector<8x32xf32>
    %c0_3 = arith.constant 0 : index
    %c0_4 = arith.constant 0 : index
    %3 = vector.load %arg3[%c0_3, %c0_4] : memref<1x32xf32, #tpu.memory_space<vmem>>, vector<1x32xf32>
    %4 = vector.broadcast %3 : vector<1x32xf32> to vector<8x32xf32>
    %5 = arith.addf %2, %4 : vector<8x32xf32>
    %c0_5 = arith.constant 0 : index
    %c0_6 = arith.constant 0 : index
    %6 = vector.load %arg4[%c0_5, %c0_6] : memref<8x32xf32, #tpu.memory_space<vmem>>, vector<8x32xf32>
    %7 = arith.addf %5, %6 : vector<8x32xf32>
    %cst_7 = arith.constant dense<0.000000e+00> : vector<8xf32>
    %8 = vector.multi_reduction <add>, %7, %cst_7 [1] : vector<8x32xf32> to vector<8xf32>
    %9 = vector.shape_cast %8 : vector<8xf32> to vector<8x1xf32>
    %cst_8 = arith.constant 3.200000e+01 : f32
    %10 = vector.broadcast %cst_8 : f32 to vector<8x1xf32>
    %11 = arith.divf %9, %10 : vector<8x1xf32>
    %12 = vector.broadcast %11 : vector<8x1xf32> to vector<8x32xf32>
    %13 = arith.subf %7, %12 : vector<8x32xf32>
    %14 = arith.mulf %13, %13 : vector<8x32xf32>
    %cst_9 = arith.constant dense<0.000000e+00> : vector<8xf32>
    %15 = vector.multi_reduction <add>, %14, %cst_9 [1] : vector<8x32xf32> to vector<8xf32>
    %16 = vector.shape_cast %15 : vector<8xf32> to vector<8x1xf32>
    %cst_10 = arith.constant 3.200000e+01 : f32
    %17 = vector.broadcast %cst_10 : f32 to vector<8x1xf32>
    %18 = arith.divf %16, %17 : vector<8x1xf32>
    %cst_11 = arith.constant 9.99999996E-13 : f32
    %19 = vector.broadcast %cst_11 : f32 to vector<8x1xf32>
    %20 = arith.addf %18, %19 : vector<8x1xf32>
    %21 = math.rsqrt %20 : vector<8x1xf32>
    %22 = vector.broadcast %21 : vector<8x1xf32> to vector<8x32xf32>
    %23 = arith.mulf %13, %22 : vector<8x32xf32>
    %c0_12 = arith.constant 0 : index
    %c0_13 = arith.constant 0 : index
    %24 = vector.load %arg5[%c0_12, %c0_13] : memref<1x32xf32, #tpu.memory_space<vmem>>, vector<1x32xf32>
    %25 = vector.broadcast %24 : vector<1x32xf32> to vector<8x32xf32>
    %26 = arith.mulf %23, %25 : vector<8x32xf32>
    %c0_14 = arith.constant 0 : index
    %c0_15 = arith.constant 0 : index
    %27 = vector.load %arg6[%c0_14, %c0_15] : memref<1x32xf32, #tpu.memory_space<vmem>>, vector<1x32xf32>
    %28 = vector.broadcast %27 : vector<1x32xf32> to vector<8x32xf32>
    %29 = arith.addf %26, %28 : vector<8x32xf32>
    %c0_16 = arith.constant 0 : index
    %c0_17 = arith.constant 0 : index
    %30 = vector.load %arg7[%c0_16, %c0_17] : memref<8x32xf32, #tpu.memory_space<vmem>>, vector<8x32xf32>
    tpu.vector_store %arg7[%c0_16, %c0_17], %29 {strides = array<i32>} : memref<8x32xf32, #tpu.memory_space<vmem>>, vector<8x32xf32>,
    return
  }
  func.func @transform_0(%arg0: i32) -> (i32, i32) {
    %c0_i32 = arith.constant 0 : i32
    %c0_i32_0 = arith.constant 0 : i32
    return %arg0, %c0_i32 : i32, i32
  }
  func.func @transform_1(%arg0: i32) -> (i32, i32) {
    %c0_i32 = arith.constant 0 : i32
    %c0_i32_0 = arith.constant 0 : i32
    %c0_i32_1 = arith.constant 0 : i32
    return %c0_i32, %c0_i32_0 : i32, i32
  }
  func.func @transform_2(%arg0: i32) -> (i32, i32) {
    %c0_i32 = arith.constant 0 : i32
    %c0_i32_0 = arith.constant 0 : i32
    %c0_i32_1 = arith.constant 0 : i32
    return %c0_i32, %c0_i32_0 : i32, i32
  }
  func.func @transform_3(%arg0: i32) -> (i32, i32) {
    %c0_i32 = arith.constant 0 : i32
    %c0_i32_0 = arith.constant 0 : i32
    return %arg0, %c0_i32 : i32, i32
  }
  func.func @transform_4(%arg0: i32) -> (i32, i32) {
    %c0_i32 = arith.constant 0 : i32
    %c0_i32_0 = arith.constant 0 : i32
    %c0_i32_1 = arith.constant 0 : i32
    return %c0_i32, %c0_i32_0 : i32, i32
  }
  func.func @transform_5(%arg0: i32) -> (i32, i32) {
    %c0_i32 = arith.constant 0 : i32
    %c0_i32_0 = arith.constant 0 : i32
    %c0_i32_1 = arith.constant 0 : i32
    return %c0_i32, %c0_i32_0 : i32, i32
  }
  func.func @transform_6(%arg0: i32) -> (i32, i32) {
    %c0_i32 = arith.constant 0 : i32
    %c0_i32_0 = arith.constant 0 : i32
    return %arg0, %c0_i32 : i32, i32
  }
}

</mosaic_0001>

<bundles_post_ra>
// kernel: _lambda_.15
= control target key start
LH: loop header
LB: loop body
LE: loop exit
PB: predicated region body
PF: predicated region fallthrough
CT: control target
= control target key end

     0   :  { %s301_s12 = smov 0   ;;  %s327_s0 = inlined_call_operand.vmem [shape: f32[16,32], index: 0, kind: input, shape index: {}]   ;;  %s328_s1 = inlined_call_operand.vmem [shape: f32[1,32], index: 1, kind: input, shape index: {}]   ;;  %s329_s2 = inlined_call_operand.vmem [shape: f32[1,32], index: 2, kind: input, shape index: {}]   ;;  %s330_s3 = inlined_call_operand.vmem [shape: f32[16,32], index: 3, kind: output, shape index: {}]  }
   0x1 LB: > { %s252_s13 = sadd.s32 4294967295, %s279_s12   ;;  %p256_p0 = scmp.ge.s32.totalorder %s279_s12, 1  ;;  %s279_s12 = sphi %s301_s12, %s13_s12  }
   0x2   : > { %p136_p1 = scmp.lt.s32.totalorder %s279_s12, 3 }
   0x4   : > { %p137_p2 = pnand %p256_p0, %p136_p1 }
   0x5   : > { %p158_p3 = scmp.lt.s32.totalorder (!%p137_p2), %s252_s13, 1 }
   0x6   : > { %140 = sbr.rel (%p137_p2) target bundleno = 324 (0x144), region = 32 }
   0xb   : > { %s332_s13 = smov (!%p158_p3, %s252_s13), 1  ;;  %vm167_vm0 = vcmask 261120   ;;  %v259_v11 = vld [vmem:[%s328_s1] ss:$0 sm:$0xff] }
   0xc   : > { %s257_s14 = sshll.u32 %s332_s13, 3  ;;  %v260_v13 = vld [vmem:[%s329_s2] ss:$0 sm:$0xff] }
   0xd   : > { %s161_s17 = scalar_lea.vmem %s327_s0, %s257_s14  ;;  %s165_s24 = scalar_lea.vmem %s330_s3, %s257_s14 }
   0xe   : > { %v166_v0 = vld [vmem:[%s161_s17] sm:$0xff] }
   0xf   : > { %v168_v1 = vsel %vm167_vm0, %v166_v0, 0.0 }
  0x10   : > { %169 = vadd.xlane.f32.xlu0 %v168_v1 }
  0x99   : > { %v170_v2 = vpop.xlane.xlu0 %169 }
  0x9a   : > { %v172_v3 = vmul.f32 0.03125, %v170_v2 }
  0x9c   : > { %v173_v4 = vsub.f32 %v166_v0, %v172_v3 }
  0x9e   : > { %v174_v5 = vmul.f32 %v173_v4, %v173_v4 }
  0xa0   : > { %v175_v6 = vsel %vm167_vm0, %v174_v5, 0.0 }
  0xa1   : > { %176 = vadd.xlane.f32.xlu0 %v175_v6 }
 0x12a   : > { %v177_v7 = vpop.xlane.xlu0 %176 }
 0x12b   : > { %v178_v8 = vmul.f32 0.03125, %v177_v7 }
 0x12d   : > { %v179_v9 = vadd.f32 1e-12, %v178_v8 }
 0x12f   : > { %271 = vrsqrt.f32 %v179_v9 }
 0x13c   : > { %v272_v10 = vpop.eup %271 }
 0x13d   : > { %v181_v12 = vmul.f32 %v272_v10, %v173_v4 }
 0x13f   : > { %v189_v14 = vmul.f32 %v259_v11, %v181_v12 }
 0x141   : > { %v197_v15 = vadd.f32 %v260_v13, %v189_v14 }
 0x143   : > { %198 = vst.msk [vmem:[%s165_s24] sm:$0xff] %vm167_vm0, %v197_v15 }
 0x144 PF: > { %s13_s12 = sadd.s32 1, %s279_s12  }
 0x145   : > { %p10_p4 = scmp.ge.s32.totalorder %s13_s12, 4  }
 0x147   :  { %12 = sbr.rel (!%p10_p4) target bundleno = 1 (0x1), region = 62 }

// kernel: _lambda_.16
= control target key start
LH: loop header
LB: loop body
LE: loop exit
PB: predicated region body
PF: predicated region fallthrough
CT: control target
= control target key end

     0   :  { %s373_s12 = smov 0   ;;  %s405_s0 = inlined_call_operand.vmem [shape: f32[16,32], index: 0, kind: input, shape index: {}]   ;;  %s406_s1 = inlined_call_operand.vmem [shape: f32[32,32], index: 1, kind: input, shape index: {}]   ;;  %s407_s2 = inlined_call_operand.vmem [shape: f32[1,32], index: 2, kind: input, shape index: {}]   ;;  %s408_s3 = inlined_call_operand.vmem [shape: f32[16,32], index: 3, kind: output, shape index: {}]  }
   0x1 LB: > { %s306_s13 = sadd.s32 4294967295, %s349_s12   ;;  %p310_p0 = scmp.ge.s32.totalorder %s349_s12, 1  ;;  %s349_s12 = sphi %s373_s12, %s13_s12  }
   0x2   : > { %p136_p1 = scmp.lt.s32.totalorder %s349_s12, 3 }
   0x4   : > { %p137_p2 = pnand %p310_p0, %p136_p1 }
   0x5   : > { %p158_p3 = scmp.lt.s32.totalorder (!%p137_p2), %s306_s13, 1 }
   0x6   : > { %140 = sbr.rel (%p137_p2) target bundleno = 216 (0xd8), region = 32 }
   0xb   : > { %v170_v0 = vld [vmem:[%s406_s1 + $0x18] sm:$0xff]  ;;  %v351_v1 = vmov 0.0   ;;  %v169_v2 = vld [vmem:[%s406_s1 + $0x10] sm:$0xff]  ;;  %vm352_vm0 = vmmov 0   ;;  %s410_s13 = smov (!%p158_p3, %s306_s13), 1  ;;  %v168_v3 = vld [vmem:[%s406_s1 + $0x8] sm:$0xff] }
   0xc   : > { %322 = vmatprep.subr.mxu0 %v351_v1  ;;  %330 = vmatprep.mubr.msk.f32.mxu0 %vm352_vm0, %v351_v1  ;;  %s311_s20 = sshll.u32 %s410_s13, 3  ;;  %v167_v4 = vld [vmem:[%s406_s1] sm:$0xff]  ;;  %vm178_vm1 = vcmask 261120  }
   0xd   : > { %323 = vmatpush3.msra.mxu0 %v170_v0  ;;  %s161_s25 = scalar_lea.vmem %s405_s0, %s311_s20  ;;  %v313_v6 = vld [vmem:[%s407_s2] ss:$0 sm:$0xff]  ;;  %s165_s30 = scalar_lea.vmem %s408_s3, %s311_s20 }
   0xe   : > { %324 = vmatprep.subr.mxu0 %v351_v1  ;;  %v166_v5 = vld [vmem:[%s161_s25] sm:$0xff] }
   0xf   : > { %325 = vmatpush3.msra.mxu0 %v169_v2 }
  0x10   : > { %326 = vmatprep.subr.mxu0 %v351_v1 }
  0x11   : > { %327 = vmatpush3.msra.mxu0 %v168_v3 }
  0x12   : > { %328 = vmatprep.subr.mxu0 %v351_v1 }
  0x13   : > { %329 = vmatpush3.msra.mxu0 %v167_v4 }
  0x14   : > { %331 = vmatmul.mubr.msk.f32.vlgmr.msra.gmra.mxu0 %vm178_vm1, %v166_v5 }
  0xd4   : > { %v248_v7 = vpop.f32.mrf.mxu0 }
  0xd5   : > { %v249_v8 = vadd.f32 %v313_v6, %v248_v7 }
  0xd6   : > { %v332_v9 = vpop.f32.mrf.mxu0 }
  0xd7   : > { %252 = vst.msk [vmem:[%s165_s30] sm:$0xff] %vm178_vm1, %v249_v8 }
  0xd8 PF: > { %s13_s12 = sadd.s32 1, %s349_s12  }
  0xd9   : > { %p10_p4 = scmp.ge.s32.totalorder %s13_s12, 4  }
  0xdb   :  { %12 = sbr.rel (!%p10_p4) target bundleno = 1 (0x1), region = 62 }

// kernel: _lambda_.19
= control target key start
LH: loop header
LB: loop body
LE: loop exit
PB: predicated region body
PF: predicated region fallthrough
CT: control target
= control target key end

     0   :  { %s776_s15 = smov 0   ;;  %s826_s0 = inlined_call_operand.vmem [shape: f32[2,8,32], index: 0, kind: input, shape index: {}]   ;;  %s827_s1 = inlined_call_operand.vmem [shape: f32[2,8,32], index: 1, kind: input, shape index: {}]   ;;  %s828_s2 = inlined_call_operand.vmem [shape: f32[2,8,32], index: 2, kind: input, shape index: {}]   ;;  %s829_s3 = inlined_call_operand.vmem [shape: f32[2,1,8], index: 3, kind: input, shape index: {}]   ;;  %s830_s4 = inlined_call_operand.vmem [shape: f32[2,8,32], index: 4, kind: output, shape index: {}]  }
   0x1 LB: > { %s673_s16 = sadd.s32 4294967295, %s745_s15   ;;  %p677_p0 = scmp.ge.s32.totalorder %s745_s15, 1  ;;  %s745_s15 = sphi %s776_s15, %s14_s15  }
   0x2   : > { %p187_p1 = scmp.lt.s32.totalorder %s745_s15, 3 }
   0x4   : > { %p188_p2 = pnand %p677_p0, %p187_p1 }
   0x5   : > { %p222_p3 = scmp.lt.s32.totalorder (!%p188_p2), %s673_s16, 1  ;;  %s749_s27 = smov (!%p188_p2), 112  }
   0x6   : > { %191 = sbr.rel (%p188_p2) target bundleno = 1345 (0x541), region = 36  ;;  %s750_s8 = smov (!%p188_p2), 16  }
   0xb   : > { %v747_v0 = vmov 0.0   ;;  %vm748_vm0 = vmmov 0   ;;  %s832_s16 = smov (!%p222_p3, %s673_s16), 1  ;;  %vm252_vm1 = vcmask 130048   ;;  %vm329_vm2 = vcmask 64512  }
   0xc   : > { %699 = vmatprep.subr.mxu0 %v747_v0  ;;  %701 = vmatprep.mubr.msk.f32.mxu0 %vm748_vm0, %v747_v0  ;;  %s786_s17 = sshll.u32 %s832_s16, 3  ;;  %s236_s26 = scalar_lea.vmem %s829_s3, %s832_s16  ;;  %vm585_vm3 = vcmask 261248  }
   0xd   : > { %704 = vmatprep.subr.mxu1 %v747_v0  ;;  %706 = vmatprep.mubr.msk.f32.mxu1 %vm748_vm0, %v747_v0  ;;  %s229_s20 = scalar_lea.vmem %s827_s1, %s786_s17  ;;  %s225_s23 = scalar_lea.vmem %s826_s0, %s786_s17  ;;  %v682_v4 = vld [vmem:[%s236_s26] ss:$0 sm:$0xff] }
   0xe   : > { %v243_v1 = vld [vmem:[%s229_s20] sm:$0xff]  ;;  %s233_s30 = scalar_lea.vmem %s828_s2, %s786_s17  ;;  %s240_s7 = scalar_lea.vmem %s830_s4, %s786_s17 }
   0xf   : > { %v241_v2 = vld [vmem:[%s225_s23] sm:$0xff]  ;;  %700 = vmatpush3.xpose.msk.msra.mxu0 %vm252_vm1, %v243_v1  ;;  %417 = vrot.lane.b32.xlu1 %v243_v1, %s749_s27 }
  0x10   : > { %v242_v3 = vmul.f32 0.25, %v241_v2  ;;  %714 = vmatprep.subr.mxu0 %v747_v0  ;;  %v244_v14 = vld [vmem:[%s233_s30] sm:$0xff] }
  0x11   : > { %705 = vmatpush3.msra.mxu1 %v244_v14 }
  0x12   : > { %702 = vmatmul.mubr.msk.f32.vlgmr.msra.gmra.mxu0 %vm252_vm1, %v242_v3  ;;  %709 = vmatprep.subr.mxu1 %v747_v0 }
  0x13   : > { %716 = vmatprep.mubr.msk.f32.mxu0 %vm748_vm0, %v747_v0  ;;  %415 = vrot.lane.b32.xlu1 %v242_v3, %s749_s27 }
  0x81   : > { %v418_v16 = vpop.permute.xlu1 %417 }
  0x85   : > { %v416_v19 = vpop.permute.xlu1 %415 }
  0xd2   : > { %v325_v5 = vpop.f32.mrf.mxu0 }
  0xd3   : > { %v326_v6 = vadd.f32 %v682_v4, %v325_v5 }
  0xd4   : > { %v703_v7 = vpop.f32.mrf.mxu0 }
  0xd5   : > { %v330_v8 = vsel %vm329_vm2, %v326_v6, -inf }
  0xd6   : > { %331 = vmax.xlane.f32.xlu0 %v330_v8 }
 0x15f   : > { %v332_v9 = vpop.xlane.xlu0 %331 }
 0x160   : > { %v333_v10 = vsub.f32 %v326_v6, %v332_v9 }
 0x162   : > { %v334_v11 = vmul.f32 1.442695, %v333_v10 }
 0x164   : > { %731 = vpow2.f32 %v334_v11 }
 0x171   : > { %v732_v12 = vpop.eup %731 }
 0x172   : > { %v336_v13 = vsel %vm329_vm2, %v732_v12, 0.0 }
 0x173   : > { %337 = vadd.xlane.f32.xlu0 %v336_v13 }
 0x1fc   : > { %v338_v15 = vpop.xlane.xlu0 %337 }
 0x1fd   : > { %733 = vrcp.f32 %v338_v15 }
 0x20a   : > { %v734_v17 = vpop.eup %733 }
 0x20b   : > { %v340_v18 = vmul.f32 %v734_v17, %v732_v12 }
 0x20d   : > { %707 = vmatmul.mubr.msk.f32.vlgmr.msra.gmra.mxu1 %vm329_vm2, %v340_v18 }
 0x20e   : > { %710 = vmatpush3.xpose.msk.msra.mxu1 %vm252_vm1, %v418_v16  ;;  %711 = vmatprep.mubr.msk.f32.mxu1 %vm748_vm0, %v747_v0 }
 0x211   : > { %712 = vmatmul.mubr.msk.f32.vlgmr.msra.gmra.mxu1 %vm252_vm1, %v416_v19 }
 0x2cd   : > { %v410_v20 = vpop.f32.mrf.mxu1 }
 0x2ce   : > { %414 = vst.msk [vmem:[%s240_s7] sm:$0xff] %vm252_vm1, %v410_v20 }
 0x2cf   : > { %v708_v21 = vpop.f32.mrf.mxu1 }
 0x2d1   : > { %v489_v22 = vpop.f32.mrf.mxu1 }
 0x2d2   : > { %v490_v23 = vadd.f32 %v682_v4, %v489_v22 }
 0x2d3   : > { %v713_v24 = vpop.f32.mrf.mxu1 }
 0x2d4   : > { %v493_v25 = vsel %vm329_vm2, %v490_v23, -inf }
 0x2d5   : > { %494 = vmax.xlane.f32.xlu0 %v493_v25 }
 0x2eb   : > { %505 = vrot.lane.b32.xlu0 %v244_v14, %s749_s27 }
 0x35e   : > { %v495_v26 = vpop.xlane.xlu0 %494 }
 0x35f   : > { %v496_v27 = vsub.f32 %v490_v23, %v495_v26 }
 0x361   : > { %v497_v28 = vmul.f32 1.442695, %v496_v27 }
 0x362   : > { %v506_v31 = vpop.permute.xlu0 %505 }
 0x363   : > { %735 = vpow2.f32 %v497_v28  ;;  %715 = vmatpush3.msra.mxu0 %v506_v31 }
 0x370   : > { %v736_v29 = vpop.eup %735 }
 0x371   : > { %v499_v30 = vsel %vm329_vm2, %v736_v29, 0.0 }
 0x372   : > { %500 = vadd.xlane.f32.xlu1 %v499_v30 }
 0x3fb   : > { %v501_v32 = vpop.xlane.xlu1 %500 }
 0x3fc   : > { %737 = vrcp.f32 %v501_v32 }
 0x409   : > { %v738_v33 = vpop.eup %737 }
 0x40a   : > { %v503_v34 = vmul.f32 %v738_v33, %v736_v29 }
 0x40c   : > { %717 = vmatmul.mubr.msk.f32.vlgmr.msra.gmra.mxu0 %vm329_vm2, %v503_v34 }
 0x4cc   : > { %v577_v35 = vpop.f32.mrf.mxu0 }
 0x4cd   : > { %582 = vrot.lane.b32.xlu0 %v577_v35, %s750_s8 }
 0x4ce   : > { %v718_v36 = vpop.f32.mrf.mxu0 }
 0x53f   : > { %v583_v37 = vpop.permute.xlu0 %582 }
 0x540   : > { %586 = vst.msk [vmem:[%s240_s7] sm:$0xff] %vm585_vm3, %v583_v37 }
 0x541 PF: > { %s14_s15 = sadd.s32 1, %s745_s15  }
 0x542   : > { %p11_p4 = scmp.ge.s32.totalorder %s14_s15, 4  }
 0x544   :  { %13 = sbr.rel (!%p11_p4) target bundleno = 1 (0x1), region = 75 }

// kernel: _lambda_.20
= control target key start
LH: loop header
LB: loop body
LE: loop exit
PB: predicated region body
PF: predicated region fallthrough
CT: control target
= control target key end

     0   :  { %s535_s21 = smov 0   ;;  %s585_s0 = inlined_call_operand.vmem [shape: f32[16,32], index: 0, kind: input, shape index: {}]   ;;  %s586_s1 = inlined_call_operand.vmem [shape: f32[32,32], index: 1, kind: input, shape index: {}]   ;;  %s587_s2 = inlined_call_operand.vmem [shape: f32[1,32], index: 2, kind: input, shape index: {}]   ;;  %s588_s3 = inlined_call_operand.vmem [shape: f32[16,32], index: 3, kind: input, shape index: {}]   ;;  %s589_s4 = inlined_call_operand.vmem [shape: f32[1,32], index: 4, kind: input, shape index: {}]   ;;  %s590_s5 = inlined_call_operand.vmem [shape: f32[1,32], index: 5, kind: input, shape index: {}]   ;;  %s591_s6 = inlined_call_operand.vmem [shape: f32[16,32], index: 6, kind: output, shape index: {}]  }
   0x1 LB: > { %s448_s22 = sadd.s32 4294967295, %s496_s21   ;;  %p452_p0 = scmp.ge.s32.totalorder %s496_s21, 1  ;;  %s496_s21 = sphi %s535_s21, %s16_s21  }
   0x2   : > { %p220_p1 = scmp.lt.s32.totalorder %s496_s21, 3 }
   0x4   : > { %p221_p2 = pnand %p452_p0, %p220_p1 }
   0x5   : > { %p252_p3 = scmp.lt.s32.totalorder (!%p221_p2), %s448_s22, 1 }
   0x6   : > { %224 = sbr.rel (%p221_p2) target bundleno = 526 (0x20e), region = 44 }
   0xb   : > { %v268_v0 = vld [vmem:[%s586_s1 + $0x18] sm:$0xff]  ;;  %v498_v1 = vmov 0.0   ;;  %v267_v2 = vld [vmem:[%s586_s1 + $0x10] sm:$0xff]  ;;  %vm499_vm0 = vmmov 0   ;;  %s593_s22 = smov (!%p252_p3, %s448_s22), 1  ;;  %v266_v3 = vld [vmem:[%s586_s1 + $0x8] sm:$0xff] }
   0xc   : > { %467 = vmatprep.subr.mxu0 %v498_v1  ;;  %475 = vmatprep.mubr.msk.f32.mxu0 %vm499_vm0, %v498_v1  ;;  %s552_s29 = sshll.u32 %s593_s22, 3  ;;  %v265_v4 = vld [vmem:[%s586_s1] sm:$0xff]  ;;  %vm276_vm1 = vcmask 261120  }
   0xd   : > { %468 = vmatpush3.msra.mxu0 %v268_v0  ;;  %s255_s10 = scalar_lea.vmem %s585_s0, %s552_s29  ;;  %s259_s13 = scalar_lea.vmem %s588_s3, %s552_s29  ;;  %v456_v6 = vld [vmem:[%s587_s2] ss:$0 sm:$0xff] }
   0xe   : > { %469 = vmatprep.subr.mxu0 %v498_v1  ;;  %v264_v5 = vld [vmem:[%s255_s10] sm:$0xff]  ;;  %s263_s23 = scalar_lea.vmem %s591_s6, %s552_s29 }
   0xf   : > { %470 = vmatpush3.msra.mxu0 %v267_v2  ;;  %v350_v8 = vld [vmem:[%s259_s13] sm:$0xff] }
  0x10   : > { %471 = vmatprep.subr.mxu0 %v498_v1  ;;  %v458_v22 = vld [vmem:[%s589_s4] ss:$0 sm:$0xff] }
  0x11   : > { %472 = vmatpush3.msra.mxu0 %v266_v3  ;;  %v459_v24 = vld [vmem:[%s590_s5] ss:$0 sm:$0xff] }
  0x12   : > { %473 = vmatprep.subr.mxu0 %v498_v1 }
  0x13   : > { %474 = vmatpush3.msra.mxu0 %v265_v4 }
  0x14   : > { %476 = vmatmul.mubr.msk.f32.vlgmr.msra.gmra.mxu0 %vm276_vm1, %v264_v5 }
  0xd4   : > { %v346_v7 = vpop.f32.mrf.mxu0 }
  0xd5   : > { %v347_v9 = vadd.f32 %v456_v6, %v346_v7 }
  0xd6   : > { %v477_v10 = vpop.f32.mrf.mxu0 }
  0xd7   : > { %v351_v11 = vadd.f32 %v350_v8, %v347_v9 }
  0xd9   : > { %v352_v12 = vsel %vm276_vm1, %v351_v11, 0.0 }
  0xda   : > { %353 = vadd.xlane.f32.xlu0 %v352_v12 }
 0x163   : > { %v354_v13 = vpop.xlane.xlu0 %353 }
 0x164   : > { %v356_v14 = vmul.f32 0.03125, %v354_v13 }
 0x166   : > { %v357_v15 = vsub.f32 %v351_v11, %v356_v14 }
 0x168   : > { %v358_v16 = vmul.f32 %v357_v15, %v357_v15 }
 0x16a   : > { %v359_v17 = vsel %vm276_vm1, %v358_v16, 0.0 }
 0x16b   : > { %360 = vadd.xlane.f32.xlu0 %v359_v17 }
 0x1f4   : > { %v361_v18 = vpop.xlane.xlu0 %360 }
 0x1f5   : > { %v362_v19 = vmul.f32 0.03125, %v361_v18 }
 0x1f7   : > { %v363_v20 = vadd.f32 1e-12, %v362_v19 }
 0x1f9   : > { %488 = vrsqrt.f32 %v363_v20 }
 0x206   : > { %v489_v21 = vpop.eup %488 }
 0x207   : > { %v365_v23 = vmul.f32 %v489_v21, %v357_v15 }
 0x209   : > { %v373_v25 = vmul.f32 %v458_v22, %v365_v23 }
 0x20b   : > { %v381_v26 = vadd.f32 %v459_v24, %v373_v25 }
 0x20d   : > { %382 = vst.msk [vmem:[%s263_s23] sm:$0xff] %vm276_vm1, %v381_v26 }
 0x20e PF: > { %s16_s21 = sadd.s32 1, %s496_s21  }
 0x20f   : > { %p13_p4 = scmp.ge.s32.totalorder %s16_s21, 4  }
 0x211   :  { %15 = sbr.rel (!%p13_p4) target bundleno = 1 (0x1), region = 77 }

// kernel: _lambda_.21
= control target key start
LH: loop header
LB: loop body
LE: loop exit
PB: predicated region body
PF: predicated region fallthrough
CT: control target
= control target key end

     0   :  { %s385_s12 = smov 0   ;;  %s417_s0 = inlined_call_operand.vmem [shape: f32[16,32], index: 0, kind: input, shape index: {}]   ;;  %s418_s1 = inlined_call_operand.vmem [shape: f32[32,64], index: 1, kind: input, shape index: {}]   ;;  %s419_s2 = inlined_call_operand.vmem [shape: f32[1,64], index: 2, kind: input, shape index: {}]   ;;  %s420_s3 = inlined_call_operand.vmem [shape: f32[16,64], index: 3, kind: output, shape index: {}]  }
   0x1 LB: > { %s316_s13 = sadd.s32 4294967295, %s361_s12   ;;  %p320_p0 = scmp.ge.s32.totalorder %s361_s12, 1  ;;  %s361_s12 = sphi %s385_s12, %s13_s12  }
   0x2   : > { %p136_p1 = scmp.lt.s32.totalorder %s361_s12, 3 }
   0x4   : > { %p137_p2 = pnand %p320_p0, %p136_p1 }
   0x5   : > { %p158_p3 = scmp.lt.s32.totalorder (!%p137_p2), %s316_s13, 1 }
   0x6   : > { %140 = sbr.rel (%p137_p2) target bundleno = 246 (0xf6), region = 32 }
   0xb   : > { %v170_v0 = vld [vmem:[%s418_s1 + $0x18] sm:$0xff]  ;;  %v363_v1 = vmov 0.0   ;;  %v169_v2 = vld [vmem:[%s418_s1 + $0x10] sm:$0xff]  ;;  %vm364_vm0 = vmmov 0   ;;  %s422_s13 = smov (!%p158_p3, %s316_s13), 1  ;;  %v168_v3 = vld [vmem:[%s418_s1 + $0x8] sm:$0xff] }
   0xc   : > { %332 = vmatprep.subr.mxu0 %v363_v1  ;;  %340 = vmatprep.mubr.msk.f32.mxu0 %vm364_vm0, %v363_v1  ;;  %s321_s20 = sshll.u32 %s422_s13, 3  ;;  %v167_v4 = vld [vmem:[%s418_s1] sm:$0xff]  ;;  %vm178_vm1 = vcmask 261120   ;;  %vm261_vm2 = vcmask 523264  }
   0xd   : > { %333 = vmatpush3.msra.mxu0 %v170_v0  ;;  %s161_s25 = scalar_lea.vmem %s417_s0, %s321_s20  ;;  %v323_v6 = vld [vmem:[%s419_s2] ss:$0 sm:$0xff]  ;;  %s165_s30 = scalar_lea.vmem %s420_s3, %s321_s20 }
   0xe   : > { %334 = vmatprep.subr.mxu0 %v363_v1  ;;  %v166_v5 = vld [vmem:[%s161_s25] sm:$0xff] }
   0xf   : > { %335 = vmatpush3.msra.mxu0 %v169_v2 }
  0x10   : > { %336 = vmatprep.subr.mxu0 %v363_v1 }
  0x11   : > { %337 = vmatpush3.msra.mxu0 %v168_v3 }
  0x12   : > { %338 = vmatprep.subr.mxu0 %v363_v1 }
  0x13   : > { %339 = vmatpush3.msra.mxu0 %v167_v4 }
  0x14   : > { %341 = vmatmul.mubr.msk.f32.vlgmr.msra.gmra.mxu0 %vm178_vm1, %v166_v5 }
  0xd4   : > { %v248_v7 = vpop.f32.mrf.mxu0 }
  0xd5   : > { %v249_v8 = vadd.f32 %v323_v6, %v248_v7 }
  0xd6   : > { %v342_v9 = vpop.f32.mrf.mxu0 }
  0xd7   : > { %v252_v10 = vmul.f32 %v249_v8, %v249_v8 }
  0xd9   : > { %v253_v11 = vmul.f32 %v252_v10, %v249_v8 }
  0xdb   : > { %v254_v12 = vmul.f32 0.044715, %v253_v11 }
  0xdd   : > { %v255_v13 = vadd.f32 %v254_v12, %v249_v8 }
  0xdf   : > { %v256_v14 = vmul.f32 0.7978846, %v255_v13 }
  0xe1   : > { %353 = vtanh.f32 %v256_v14 }
  0xee   : > { %v354_v15 = vpop.eup %353 }
  0xef   : > { %v258_v16 = vadd.f32 1.0, %v354_v15 }
  0xf1   : > { %v259_v17 = vmul.f32 0.5, %v258_v16 }
  0xf3   : > { %v260_v18 = vmul.f32 %v259_v17, %v249_v8 }
  0xf5   : > { %262 = vst.msk [vmem:[%s165_s30] sm:$0xff] %vm261_vm2, %v260_v18 }
  0xf6 PF: > { %s13_s12 = sadd.s32 1, %s361_s12  }
  0xf7   : > { %p10_p4 = scmp.ge.s32.totalorder %s13_s12, 4  }
  0xf9   :  { %12 = sbr.rel (!%p10_p4) target bundleno = 1 (0x1), region = 62 }

// kernel: _lambda_.22
= control target key start
LH: loop header
LB: loop body
LE: loop exit
PB: predicated region body
PF: predicated region fallthrough
CT: control target
= control target key end

     0   :  { %s552_s21 = smov 0   ;;  %s613_s0 = inlined_call_operand.vmem [shape: f32[16,64], index: 0, kind: input, shape index: {}]   ;;  %s614_s1 = inlined_call_operand.vmem [shape: f32[64,32], index: 1, kind: input, shape index: {}]   ;;  %s615_s2 = inlined_call_operand.vmem [shape: f32[1,32], index: 2, kind: input, shape index: {}]   ;;  %s616_s3 = inlined_call_operand.vmem [shape: f32[16,32], index: 3, kind: input, shape index: {}]   ;;  %s617_s4 = inlined_call_operand.vmem [shape: f32[1,32], index: 4, kind: input, shape index: {}]   ;;  %s618_s5 = inlined_call_operand.vmem [shape: f32[1,32], index: 5, kind: input, shape index: {}]   ;;  %s619_s6 = inlined_call_operand.vmem [shape: f32[16,32], index: 6, kind: output, shape index: {}]  }
   0x1 LB: > { %s453_s22 = sadd.s32 4294967295, %s513_s21   ;;  %p457_p0 = scmp.ge.s32.totalorder %s513_s21, 1  ;;  %s513_s21 = sphi %s552_s21, %s16_s21  }
   0x2   : > { %p220_p1 = scmp.lt.s32.totalorder %s513_s21, 3 }
   0x4   : > { %p221_p2 = pnand %p457_p0, %p220_p1 }
   0x5   : > { %p252_p3 = scmp.lt.s32.totalorder (!%p221_p2), %s453_s22, 1 }
   0x6   : > { %224 = sbr.rel (%p221_p2) target bundleno = 534 (0x216), region = 44 }
   0xb   : > { %v272_v0 = vld [vmem:[%s614_s1 + $0x38] sm:$0xff]  ;;  %v515_v1 = vmov 0.0   ;;  %v271_v2 = vld [vmem:[%s614_s1 + $0x30] sm:$0xff]  ;;  %vm516_vm0 = vmmov 0   ;;  %v270_v3 = vld [vmem:[%s614_s1 + $0x28] sm:$0xff]  ;;  %s621_s22 = smov (!%p252_p3, %s453_s22), 1 }
   0xc   : > { %476 = vmatprep.subr.mxu0 %v515_v1  ;;  %492 = vmatprep.mubr.msk.f32.mxu0 %vm516_vm0, %v515_v1  ;;  %v269_v4 = vld [vmem:[%s614_s1 + $0x20] sm:$0xff]  ;;  %v268_v5 = vld [vmem:[%s614_s1 + $0x18] sm:$0xff]  ;;  %s575_s9 = sshll.u32 %s621_s22, 3  ;;  %v267_v6 = vld [vmem:[%s614_s1 + $0x10] sm:$0xff]  ;;  %vm280_vm1 = vcmask 523264   ;;  %vm356_vm2 = vcmask 261120  }
   0xd   : > { %477 = vmatpush3.msra.mxu0 %v272_v0  ;;  %v266_v7 = vld [vmem:[%s614_s1 + $0x8] sm:$0xff]  ;;  %s255_s16 = scalar_lea.vmem %s613_s0, %s575_s9  ;;  %v265_v8 = vld [vmem:[%s614_s1] sm:$0xff]  ;;  %s259_s22 = scalar_lea.vmem %s616_s3, %s575_s9 }
   0xe   : > { %478 = vmatprep.subr.mxu0 %v515_v1  ;;  %v264_v9 = vld [vmem:[%s255_s16] sm:$0xff]  ;;  %s263_s7 = scalar_lea.vmem %s619_s6, %s575_s9 }
   0xf   : > { %479 = vmatpush3.msra.mxu0 %v271_v2  ;;  %v461_v10 = vld [vmem:[%s615_s2] ss:$0 sm:$0xff] }
  0x10   : > { %480 = vmatprep.subr.mxu0 %v515_v1  ;;  %v354_v12 = vld [vmem:[%s259_s22] sm:$0xff] }
  0x11   : > { %481 = vmatpush3.msra.mxu0 %v270_v3  ;;  %v463_v26 = vld [vmem:[%s617_s4] ss:$0 sm:$0xff] }
  0x12   : > { %482 = vmatprep.subr.mxu0 %v515_v1  ;;  %v464_v28 = vld [vmem:[%s618_s5] ss:$0 sm:$0xff] }
  0x13   : > { %483 = vmatpush3.msra.mxu0 %v269_v4 }
  0x14   : > { %484 = vmatprep.subr.mxu0 %v515_v1 }
  0x15   : > { %485 = vmatpush3.msra.mxu0 %v268_v5 }
  0x16   : > { %486 = vmatprep.subr.mxu0 %v515_v1 }
  0x17   : > { %487 = vmatpush3.msra.mxu0 %v267_v6 }
  0x18   : > { %488 = vmatprep.subr.mxu0 %v515_v1 }
  0x19   : > { %489 = vmatpush3.msra.mxu0 %v266_v7 }
  0x1a   : > { %490 = vmatprep.subr.mxu0 %v515_v1 }
  0x1b   : > { %491 = vmatpush3.msra.mxu0 %v265_v8 }
  0x1c   : > { %493 = vmatmul.mubr.msk.f32.vlgmr.msra.gmra.mxu0 %vm280_vm1, %v264_v9 }
  0xdc   : > { %v350_v11 = vpop.f32.mrf.mxu0 }
  0xdd   : > { %v351_v13 = vadd.f32 %v461_v10, %v350_v11 }
  0xde   : > { %v494_v14 = vpop.f32.mrf.mxu0 }
  0xdf   : > { %v355_v15 = vadd.f32 %v354_v12, %v351_v13 }
  0xe1   : > { %v357_v16 = vsel %vm356_vm2, %v355_v15, 0.0 }
  0xe2   : > { %358 = vadd.xlane.f32.xlu0 %v357_v16 }
 0x16b   : > { %v359_v17 = vpop.xlane.xlu0 %358 }
 0x16c   : > { %v361_v18 = vmul.f32 0.03125, %v359_v17 }
 0x16e   : > { %v362_v19 = vsub.f32 %v355_v15, %v361_v18 }
 0x170   : > { %v363_v20 = vmul.f32 %v362_v19, %v362_v19 }
 0x172   : > { %v364_v21 = vsel %vm356_vm2, %v363_v20, 0.0 }
 0x173   : > { %365 = vadd.xlane.f32.xlu0 %v364_v21 }
 0x1fc   : > { %v366_v22 = vpop.xlane.xlu0 %365 }
 0x1fd   : > { %v367_v23 = vmul.f32 0.03125, %v366_v22 }
 0x1ff   : > { %v368_v24 = vadd.f32 1e-12, %v367_v23 }
 0x201   : > { %505 = vrsqrt.f32 %v368_v24 }
 0x20e   : > { %v506_v25 = vpop.eup %505 }
 0x20f   : > { %v370_v27 = vmul.f32 %v506_v25, %v362_v19 }
 0x211   : > { %v378_v29 = vmul.f32 %v463_v26, %v370_v27 }
 0x213   : > { %v386_v30 = vadd.f32 %v464_v28, %v378_v29 }
 0x215   : > { %387 = vst.msk [vmem:[%s263_s7] sm:$0xff] %vm356_vm2, %v386_v30 }
 0x216 PF: > { %s16_s21 = sadd.s32 1, %s513_s21  }
 0x217   : > { %p13_p4 = scmp.ge.s32.totalorder %s16_s21, 4  }
 0x219   :  { %15 = sbr.rel (!%p13_p4) target bundleno = 1 (0x1), region = 77 }

</bundles_post_ra>
